<compile_context>
chip_gen: v7x
topology: tpu7x:2x2x1
jax: 0.10.0
libtpu: 0.0.40
codegen_flags: <defaults>
</compile_context>

<pallas_src>
import math
import functools

import numpy as np
import jax
import jax.numpy as jnp
from jax.experimental import pallas as pl
from jax.experimental.pallas import tpu as pltpu


def _round_up(a: int, m: int) -> int:
    return ((a + m - 1) // m) * m


def _sincos_kernel(x_ref, s_ref, sel_ref, out_ref, *, max_position: float, use_dot: bool):
    # x_ref:   (rows_per_block, G) float32   packed positions (G per output row)
    # s_ref:   (G, W) float32                selector with div_term/max_position folded in
    # sel_ref: (1, W) float32                1.0 -> sin lane, 0.0 -> cos lane
    # out_ref: (rows_per_block, W) float32   lane-dense output tile (W = 128 when packed)
    xc = jnp.clip(x_ref[...], 0.0, max_position)
    if use_dot:
        # Expand each clipped x across its D lanes and fold in div_term on the MXU.
        # HIGHEST precision keeps the full f32 mantissa of x through the matmul.
        pos = jnp.dot(
            xc, s_ref[...],
            preferred_element_type=jnp.float32,
            precision=jax.lax.Precision.HIGHEST,
        )
    else:
        pos = xc * s_ref[...]                 # (R, 1) * (1, D) broadcast fallback
    out_ref[...] = jnp.where(sel_ref[...] > 0.5, jnp.sin(pos), jnp.cos(pos))


def sine_cosine_position_encoder(x, embedding_dim: int = 32,
                                 max_position: float = 100.0,
                                 block_rows: int = 1024):
    """x: (B,) float array -> (B, embedding_dim) sine/cosine position encoding."""
    assert embedding_dim % 2 == 0, "odd embedding_dim: torch ref returns D-1 cols"
    # TODO(synk): odd embedding_dim path (torch silently drops the last column) not replicated.
    D = embedding_dim
    half = D // 2

    xf = jnp.asarray(x, dtype=jnp.float32).reshape(-1)
    B = xf.shape[0]

    # Lane-dense packing: G batch elements share one 128-lane output row when possible.
    use_dense = (D <= 128) and (128 % D == 0)
    G = 128 // D if use_dense else 1
    W = G * D
    use_dot = G > 1

    rows = -(-B // G)                                    # packed rows needed
    rows_per_block = min(block_rows, _round_up(max(rows, 1), 8))
    rows_padded = _round_up(rows, rows_per_block)
    b_padded = rows_padded * G
    grid = (rows_padded // rows_per_block,)

    if b_padded != B:                                    # zero-pad partial tiles
        xf = jnp.pad(xf, (0, b_padded - B))
    x2 = xf.reshape(rows_padded, G)

    # Host-side constants (hoisted out of the kernel; tiny, replicated every tile).
    j = np.arange(D, dtype=np.float64) % half            # div_term index per lane in a group
    div_full = np.exp(-math.log(10000.0) * 2.0 * j / D) / max_position
    if use_dot:
        s_mat = np.zeros((G, W), dtype=np.float32)
        for g in range(G):
            s_mat[g, g * D:(g + 1) * D] = div_full
    else:
        s_mat = div_full.reshape(1, D).astype(np.float32)
    sel = ((np.arange(W) % D) < half).astype(np.float32).reshape(1, W)

    kernel = functools.partial(
        _sincos_kernel, max_position=float(max_position), use_dot=use_dot
    )

    out2 = pl.pallas_call(
        kernel,
        out_shape=jax.ShapeDtypeStruct((rows_padded, W), jnp.float32),
        grid_spec=pltpu.PrefetchScalarGridSpec(
            num_scalar_prefetch=0,
            grid=grid,
            in_specs=[
                pl.BlockSpec((rows_per_block, G), lambda i: (i, 0)),
                pl.BlockSpec(tuple(s_mat.shape), lambda i: (0, 0)),
                pl.BlockSpec((1, W), lambda i: (0, 0)),
            ],
            out_specs=pl.BlockSpec((rows_per_block, W), lambda i: (i, 0)),
        ),
        compiler_params=pltpu.CompilerParams(
            dimension_semantics=("parallel",),
        ),
        cost_estimate=pl.CostEstimate(
            flops=4 * rows_padded * W,
            transcendentals=2 * rows_padded * W,
            bytes_accessed=4 * (rows_padded * G + rows_padded * W + s_mat.size + W),
        ),
    )(x2, jnp.asarray(s_mat), jnp.asarray(sel))

    # Row-major (rows_padded, W) is bit-identical to (b_padded, D): free reshape.
    return out2.reshape(b_padded, D)[:B]


def _reference(x, embedding_dim=32, max_position=100.0):
    x = x.astype(jnp.float32)
    x_norm = jnp.clip(x, 0.0, max_position) / max_position
    half = embedding_dim // 2
    emb = jnp.arange(half, dtype=jnp.float32)
    div_term = jnp.exp(-math.log(10000.0) * (2.0 * emb / embedding_dim))
    pos = x_norm[:, None] * div_term[None, :]
    return jnp.concatenate([jnp.sin(pos), jnp.cos(pos)], axis=1)


if __name__ == "__main__":
    key = jax.random.PRNGKey(0)
    batch = 8
    embedding_dim = 32
    # values spanning below 0 and above max_position to exercise clamping
    x = jax.random.uniform(key, (batch,), minval=-10.0, maxval=120.0, dtype=jnp.float32)

    out = sine_cosine_position_encoder(x, embedding_dim=embedding_dim, max_position=100.0)
    out = jax.block_until_ready(out)

    ref = _reference(x, embedding_dim=embedding_dim, max_position=100.0)
    assert out.shape == (batch, embedding_dim), out.shape
    max_err = float(jnp.max(jnp.abs(out - ref)))
    assert jnp.allclose(out, ref, atol=1e-5, rtol=1e-5), f"mismatch vs reference: {max_err}"

    print("KERNEL_OK")
</pallas_src>

<mosaic_0001>
module attributes {stable_mosaic.version = 11 : i64} {
  func.func @_sincos_kernel(%arg0: i32, %arg1: memref<8x4xf32, #tpu.memory_space<vmem>>, %arg2: memref<4x128xf32, #tpu.memory_space<vmem>>, %arg3: memref<1x128xf32, #tpu.memory_space<vmem>>, %arg4: memref<8x128xf32, #tpu.memory_space<vmem>>) attributes {dimension_semantics = [#tpu.dimension_semantics<parallel>], iteration_bounds = array<i64: 1>, scalar_prefetch = 0 : i64, scratch_operands = 0 : i64, tpu.core_type = #tpu.core_type<tc>, window_params = [{transform_indices = @transform_0, window_bounds = array<i64: 8, 4>}, {pipeline_mode = #tpu.pipeline_mode<synchronous>, transform_indices = @transform_1, window_bounds = array<i64: 4, 128>}, {pipeline_mode = #tpu.pipeline_mode<synchronous>, transform_indices = @transform_2, window_bounds = array<i64: 1, 128>}, {transform_indices = @transform_3, window_bounds = array<i64: 8, 128>}]} {
    %c0 = arith.constant 0 : index
    %c0_0 = arith.constant 0 : index
    %0 = vector.load %arg1[%c0, %c0_0] : memref<8x4xf32, #tpu.memory_space<vmem>>, vector<8x4xf32>
    %cst = arith.constant 0.000000e+00 : f32
    %cst_1 = arith.constant 1.000000e+02 : f32
    %1 = vector.broadcast %cst : f32 to vector<8x4xf32>
    %2 = arith.maximumf %1, %0 : vector<8x4xf32>
    %3 = vector.broadcast %cst_1 : f32 to vector<8x4xf32>
    %4 = arith.minimumf %3, %2 : vector<8x4xf32>
    %c0_2 = arith.constant 0 : index
    %c0_3 = arith.constant 0 : index
    %5 = vector.load %arg2[%c0_2, %c0_3] : memref<4x128xf32, #tpu.memory_space<vmem>>, vector<4x128xf32>
    %cst_4 = arith.constant dense<0.000000e+00> : vector<8x128xf32>
    %6 = tpu.matmul %4, %5, %cst_4 {dimension_numbers = #tpu.dot_dimension_numbers<[1], [0], [0], [1], [0, 0, 1, 1], [], []>, precision = #tpu.contract_precision<fp32>} : vector<8x4xf32>, vector<4x128xf32>, vector<8x128xf32> -> vector<8x128xf32>
    %c0_5 = arith.constant 0 : index
    %c0_6 = arith.constant 0 : index
    %7 = vector.load %arg3[%c0_5, %c0_6] : memref<1x128xf32, #tpu.memory_space<vmem>>, vector<1x128xf32>
    %cst_7 = arith.constant 5.000000e-01 : f32
    %8 = vector.broadcast %cst_7 : f32 to vector<1x128xf32>
    %9 = arith.cmpf ogt, %7, %8 : vector<1x128xf32>
    %10 = math.sin %6 : vector<8x128xf32>
    %11 = math.cos %6 : vector<8x128xf32>
    %12 = vector.shape_cast %9 : vector<1x128xi1> to vector<1x128xi1>
    %13 = vector.broadcast %12 : vector<1x128xi1> to vector<8x128xi1>
    %14 = arith.select %13, %10, %11 : vector<8x128xi1>, vector<8x128xf32>
    %c0_8 = arith.constant 0 : index
    %c0_9 = arith.constant 0 : index
    %15 = vector.load %arg4[%c0_8, %c0_9] : memref<8x128xf32, #tpu.memory_space<vmem>>, vector<8x128xf32>
    tpu.vector_store %arg4[%c0_8, %c0_9], %14 {strides = array<i32>} : memref<8x128xf32, #tpu.memory_space<vmem>>, vector<8x128xf32>,
    return
  }
  func.func @transform_0(%arg0: i32) -> (i32, i32) {
    %c0_i32 = arith.constant 0 : i32
    %c0_i32_0 = arith.constant 0 : i32
    return %arg0, %c0_i32 : i32, i32
  }
  func.func @transform_1(%arg0: i32) -> (i32, i32) {
    %c0_i32 = arith.constant 0 : i32
    %c0_i32_0 = arith.constant 0 : i32
    %c0_i32_1 = arith.constant 0 : i32
    return %c0_i32, %c0_i32_0 : i32, i32
  }
  func.func @transform_2(%arg0: i32) -> (i32, i32) {
    %c0_i32 = arith.constant 0 : i32
    %c0_i32_0 = arith.constant 0 : i32
    %c0_i32_1 = arith.constant 0 : i32
    return %c0_i32, %c0_i32_0 : i32, i32
  }
  func.func @transform_3(%arg0: i32) -> (i32, i32) {
    %c0_i32 = arith.constant 0 : i32
    %c0_i32_0 = arith.constant 0 : i32
    return %arg0, %c0_i32 : i32, i32
  }
}

</mosaic_0001>

<bundles_post_ra>
// kernel: tpu_custom_call.1
= control target key start
LH: loop header
LB: loop body
LE: loop exit
PB: predicated region body
PF: predicated region fallthrough
CT: control target
= control target key end

     0   :  { %vm23_vm0 = vcmask 1043456   ;;  %v805_v2 = vmov 0.0   ;;  %vm806_vm1 = vmmov 0   ;;  %s884_s0 = inlined_call_operand.vmem [shape: f32[8,4], index: 0, kind: input, shape index: {}]   ;;  %s885_s1 = inlined_call_operand.vmem [shape: f32[4,128], index: 1, kind: input, shape index: {}]   ;;  %s886_s2 = inlined_call_operand.vmem [shape: f32[1,128], index: 2, kind: input, shape index: {}]   ;;  %s887_s3 = inlined_call_operand.hbm [shape: f32[8,128], index: 3, kind: output, shape index: {}]  }
   0x1   :  { %v18_v0 = vld [vmem:[%s885_s1] sm:$0xf]  ;;  %739 = vmatprep.subr.mxu0 %v805_v2  ;;  %741 = vmatprep.mubr.msk.f32.mxu0 %vm806_vm1, %v805_v2 }
   0x2   :  { %v15_v1 = vld [vmem:[%s884_s0] sm:$0xff]  ;;  %v25_v3 = vsel %vm23_vm0, %v18_v0, 0 }
   0x3   :  { %v16_v4 = vmax.f32 %v15_v1, 0.0 }
   0x4   :  { %8 = vsyncpa [#allocation3], 0  ;;  %v28_v5 = vand.u32 4294901760, %v25_v3  ;;  %vm19_vm2 = vcmask 31744   ;;  %724 = vmatprep.subr.mxu1 %v805_v2  ;;  %726 = vmatprep.mubr.msk.f32.mxu1 %vm806_vm1, %v805_v2  ;;  %v807_v32 = vmov 683565275  }
   0x5   :  { %v17_v6 = vmin.f32 %v16_v4, 100.0  ;;  %v808_v34 = vmov 2475754826   ;;  %v809_v37 = vmov 2131351028  }
   0x6   :  { %v105_v7 = vsub.f32 %v25_v3, %v28_v5  ;;  %740 = vmatpush3.msra.mxu0 %v28_v5  ;;  %725 = vmatpush3.msra.mxu1 %v28_v5  ;;  %v810_v40 = vmov 2102212464   ;;  %v811_v43 = vmov 920167782   ;;  %v812_v46 = vmov 1326507024  }
   0x7   :  { %v21_v8 = vsel %vm19_vm2, %v17_v6, 0  ;;  %729 = vmatprep.subr.mxu1 %v805_v2  ;;  %744 = vmatprep.subr.mxu0 %v805_v2 }
   0x8   :  { %v93_v9 = vand.u32 4294901760, %v21_v8  ;;  %v106_v10 = vand.u32 4294901760, %v105_v7 }
   0xa   :  { %v94_v11 = vsub.f32 %v21_v8, %v93_v9  ;;  %v107_v12 = vsub.f32 %v105_v7, %v106_v10 }
   0xc   :  { %v95_v13 = vand.u32 4294901760, %v94_v11  ;;  %v108_v15 = vand.u32 4294901760, %v107_v12 }
   0xe   :  { %742 = vmatmul.mubr.f32.vlgmr.msra.gmra.mrb[0].mxu0 %v95_v13  ;;  %v96_v14 = vsub.f32 %v94_v11, %v95_v13 }
   0xf   :  { %745 = vmatpush3.msra.mxu0 %v106_v10  ;;  %746 = vmatprep.mubr.msk.f32.mxu0 %vm806_vm1, %v805_v2 }
  0x10   :  { %v97_v16 = vand.u32 4294901760, %v96_v14  ;;  %749 = vmatprep.subr.mxu0 %v805_v2 }
  0x12   :  { %727 = vmatmul.mubr.f32.vlgmr.msra.gmra.mrb[0].mxu1 %v97_v16 }
  0x13   :  { %730 = vmatpush3.msra.mxu1 %v108_v15  ;;  %731 = vmatprep.mubr.msk.f32.mxu1 %vm806_vm1, %v805_v2 }
  0x14   :  { %734 = vmatprep.subr.mxu1 %v805_v2 }
  0x16   :  { %747 = vmatmul.mubr.f32.vlgmr.msra.gmra.mrb[0].mxu0 %v93_v9 }
  0x17   :  { %750 = vmatpush3.msra.mxu0 %v28_v5  ;;  %751 = vmatprep.mubr.msk.f32.mxu0 %vm806_vm1, %v805_v2 }
  0x1a   :  { %732 = vmatmul.mubr.f32.vlgmr.msra.gmra.mrb[0].mxu1 %v93_v9 }
  0x1b   :  { %735 = vmatpush3.msra.mxu1 %v105_v7  ;;  %736 = vmatprep.mubr.msk.f32.mxu1 %vm806_vm1, %v805_v2 }
  0x1e   :  { %752 = vmatmul.mubr.f32.vlgmr.msra.gmra.mrb[0].mxu0 %v93_v9 }
  0x22   :  { %737 = vmatmul.mubr.f32.vlgmr.msra.gmra.mrb[0].mxu1 %v94_v11 }
  0xf1   :  { %v469_v17 = vpop.f32.mrb[0].mxu0 }
  0xf2   :  { %v753_v18 = vpop.f32.mrb[1].mxu0 }
  0xf5   :  { %v249_v19 = vpop.f32.mrb[0].mxu1 }
  0xf6   :  { %v847_v20 = vadd.f32 %v469_v17, %v249_v19  ;;  %v738_v21 = vpop.f32.mrb[1].mxu1 }
  0xf8   :  { %v478_v22 = vand.u32 2139095040, %v847_v20  ;;  %v475_v26 = vand.u32 2147483647, %v847_v20  ;;  %vm477_vm10 = vcmp.lt.s32.totalorder %v847_v20, 0 }
  0xfa   :  { %v479_v23 = vshrl.u32 %v478_v22, 23  ;;  %v482_v29 = vand.u32 8388607, %v475_v26  ;;  %vm476_vm11 = vcmp.le.f32.partialorder %v475_v26, 0.7853982 }
  0xfc   :  { %v704_v24 = vadd.s32 4294967169, %v479_v23  ;;  %v483_v48 = vor.u32 8388608, %v482_v29 }
  0xfe   :  { %v485_v25 = vadd.s32 1, %v704_v24  ;;  %v523_v62 = vshll.u32 %v483_v48, 8 }
 0x100   :  { %vm486_vm3 = vcmp.gt.s32.totalorder %v485_v25, 0 }
 0x101   :  { %v487_v27 = vsel %vm486_vm3, %v485_v25, 0 }
 0x102   :  { %v489_v28 = vand.u32 31, %v487_v27  ;;  %v488_v31 = vshrl.u32 %v487_v27, 5 }
 0x104   :  { %v490_v30 = vsub.s32 32, %v489_v28  ;;  %v492_v33 = vshll.u32 %v807_v32, %v489_v28  ;;  %v495_v35 = vshll.u32 %v808_v34, %v489_v28  ;;  %v498_v39 = vshll.u32 %v809_v37, %v489_v28 }
 0x105   :  { %v501_v42 = vshll.u32 %v810_v40, %v489_v28  ;;  %v504_v45 = vshll.u32 %v811_v43, %v489_v28  ;;  %vm507_vm4 = vcmp.lt.s32.totalorder %v488_v31, 1  ;;  %vm510_vm5 = vcmp.lt.s32.totalorder %v488_v31, 4 }
 0x106   :  { %v493_v36 = vshrl.u32 %v808_v34, %v490_v30  ;;  %v496_v38 = vshrl.u32 %v809_v37, %v490_v30  ;;  %v499_v41 = vshrl.u32 %v810_v40, %v490_v30  ;;  %v502_v44 = vshrl.u32 %v811_v43, %v490_v30 }
 0x107   :  { %v505_v47 = vshrl.u32 %v812_v46, %v490_v30  ;;  %v491_v57 = vshrl.u32 %v807_v32, %v490_v30  ;;  %vm509_vm6 = vcmp.lt.s32.totalorder %v488_v31, 3  ;;  %vm508_vm7 = vcmp.lt.s32.totalorder %v488_v31, 2 }
 0x108   :  { %v494_v49 = vor.u32 %v493_v36, %v492_v33  ;;  %v497_v50 = vor.u32 %v496_v38, %v495_v35  ;;  %v500_v51 = vor.u32 %v499_v41, %v498_v39  ;;  %v503_v52 = vor.u32 %v502_v44, %v501_v42  ;;  %v473_v41 = vld [vmem:[%s886_s2] sm:$0x1]  ;;  %s814_s2 = smov [#allocation2]  }
 0x109   :  { %v506_v53 = vor.u32 %v505_v47, %v504_v45  ;;  %v683_v37 = vlaneseq  ;;  %vm474_vm12 = vcmp.gt.f32.partialorder %v473_v41, 0.5  ;;  %v813_v46 = vmov 0   ;;  %s696_s16 = sshll.u32 %s814_s2, 4  ;;  %s697_s16 = int_to_ptr.vmem [resolvable:$true] %s696_s16 }
 0x10a   :  { %v512_v54 = vsel %vm510_vm5, %v500_v51, 2102212464  ;;  %v515_v55 = vsel %vm507_vm4, %v494_v49, %v497_v50  ;;  %v519_v56 = vsel %vm507_vm4, %v497_v50, %v500_v51  ;;  %v516_v58 = vsel %vm510_vm5, %v503_v52, 920167782  ;;  %s781_s17 = scalar_lea.vmem %s697_s16, 128  ;;  %p786_p1 = scmp.lt.s32.totalorder %s697_s16, %s697_s16 }
 0x10b   :  { %v520_v59 = vsel %vm510_vm5, %v506_v53, 1326507024  ;;  %v517_v60 = vsel %vm509_vm6, %v500_v51, %v516_v58  ;;  %v511_v63 = vsel %vm507_vm4, %v491_v57, %v494_v49  ;;  %v513_v0 = vsel %vm509_vm6, %v497_v50, %v512_v54  ;;  %p782_p0 = scmp.ne.s32.totalorder %s697_s16, %s781_s17  ;;  %p787_p2 = scmp.lt.s32.totalorder %s781_s17, %s781_s17 }
 0x10c   :  { %v521_v61 = vsel %vm509_vm6, %v503_v52, %v520_v59  ;;  %v518_v1 = vsel %vm508_vm7, %v515_v55, %v517_v60  ;;  %v514_v7 = vsel %vm508_vm7, %v511_v63, %v513_v0  ;;  %v684_v42 = vshrl.u32 %v683_v37, 7 }
 0x10d   :  { %v522_v2 = vsel %vm508_vm7, %v519_v56, %v521_v61  ;;  %v856_v5 = vmul.u32.u64.low %v523_v62, %v518_v1  ;;  %v857_v6 = vmul.u32.u64.high %v523_v62, %v518_v1, %v856_v5  ;;  %v530_v9 = vmul.u32 %v523_v62, %v514_v7  ;;  %p788_p3 = por %p787_p2, %p786_p1 }
 0x10e   :  { %v853_v3 = vmul.u32.u64.low %v523_v62, %v522_v2  ;;  %v854_v4 = vmul.u32.u64.high %v523_v62, %v522_v2, %v853_v3  ;;  %v685_v45 = vsub.s32 0, %v684_v42  ;;  %v682_v47 = vsel %vm474_vm12, 1, %v813_v46 }
 0x10f   :  { %v533_v8 = vadd.s32 1, %v857_v6  ;;  %vm567_vm4 = vweird.f32 %v847_v20  ;;  %p789_p4 = pnand %p788_p3, %p782_p0 }
 0x110   :  { %vm532_vm8 = vc.u32 %v854_v4, %v856_v5  ;;  %v531_v22 = vadd.s32 %v856_v5, %v854_v4  ;;  %v686_v26 = vrot.slane %v682_v47, %v685_v45 }
 0x111   :  { %v534_v10 = vsel %vm532_vm8, %v533_v8, %v857_v6 }
 0x112   :  { %v535_v11 = vadd.s32 %v534_v10, %v530_v9  ;;  %vm687_vm15 = vcmp.eq.s32.totalorder %v686_v26, 1 }
 0x114   :  { %v536_v12 = vadd.s32 536870912, %v535_v11 }
 0x116   :  { %v537_v13 = vshrl.u32 %v536_v12, 30 }
 0x118   :  { %v538_v14 = vshll.u32 %v537_v13, 30  ;;  %v561_v35 = vsub.s32 4, %v537_v13 }
 0x11a   :  { %v539_v15 = vsub.s32 %v535_v11, %v538_v14  ;;  %v562_v39 = vsel %vm477_vm10, %v561_v35, %v537_v13 }
 0x11b   :  { %v564_v43 = vsel %vm476_vm11, 0, %v562_v39 }
 0x11c   :  { %v541_v16 = vsub.s32 0, %v539_v15  ;;  %v568_v44 = vadd.s32 3, %v564_v43  ;;  %v672_v49 = vand.u32 3, %v564_v43 }
 0x11e   :  { %v705_v17 = vmin.u32 %v541_v16, %v539_v15  ;;  %v569_v48 = vand.u32 3, %v568_v44  ;;  %vm677_vm14 = vcmp.eq.s32.totalorder %v672_v49, 2  ;;  %vm674_vm1 = vcmp.eq.s32.totalorder %v672_v49, 0 }
 0x11f   :  { %vm673_vm3 = vcmp.lt.s32.totalorder %v672_v49, 2 }
 0x120   :  { %v543_v18 = vclz %v705_v17  ;;  %vm574_vm13 = vcmp.eq.s32.totalorder %v569_v48, 2  ;;  %vm571_vm0 = vcmp.eq.s32.totalorder %v569_v48, 0  ;;  %vm570_vm2 = vcmp.lt.s32.totalorder %v569_v48, 2 }
 0x122   :  { %v706_v19 = vadd.s32 4294967294, %v543_v18 }
 0x124   :  { %vm707_vm9 = vcmp.lt.s32.totalorder %v706_v19, 0 }
 0x125   :  { %v546_v21 = vsel %vm707_vm9, 0, %v706_v19 }
 0x126   :  { %v547_v23 = vsub.s32 32, %v546_v21  ;;  %v551_v24 = vsub.s32 4294967266, %v546_v21  ;;  %v548_v25 = vshll.u32 %v539_v15, %v546_v21 }
 0x128   :  { %v549_v27 = vshrl.u32 %v531_v22, %v547_v23  ;;  %v552_v28 = vadd.s32 127, %v551_v24 }
 0x12a   :  { %v550_v29 = vor.u32 %v549_v27, %v548_v25  ;;  %v553_v30 = vshll.u32 %v552_v28, 23 }
 0x12c   :  { %v554_v31 = vor.u32 4788187, %v553_v30  ;;  %v557_v33 = vcvt.s32.f32 %v550_v29 }
 0x12e   :  { %v555_v32 = vand.u32 2147483647, %v554_v31 }
 0x130   :  { %v558_v34 = vmul.f32 %v557_v33, %v555_v32 }
 0x132   :  { %v559_v36 = vxor.u32 2147483648, %v558_v34 }
 0x134   :  { %v560_v38 = vsel %vm477_vm10, %v559_v36, %v558_v34 }
 0x135   :  { %v563_v40 = vsel %vm476_vm11, %v847_v20, %v560_v38 }
 0x136   :  { %777 = vcosq.f32 %v563_v40 }
 0x137   :  { %779 = vsinq.f32 %v563_v40 }
 0x140   :  { %v778_v50 = vpop.eup %777 }
 0x141   :  { %v780_v51 = vpop.eup %779  ;;  %v575_v52 = vxor.u32 2147483648, %v778_v50 }
 0x142   :  { %v572_v53 = vxor.u32 2147483648, %v780_v51 }
 0x143   :  { %v576_v54 = vsel %vm574_vm13, %v575_v52, %v780_v51  ;;  %v679_v55 = vsel %vm677_vm14, %v575_v52, %v780_v51 }
 0x144   :  { %v573_v56 = vsel %vm571_vm0, %v778_v50, %v572_v53  ;;  %v676_v57 = vsel %vm674_vm1, %v778_v50, %v572_v53 }
 0x145   :  { %v577_v58 = vsel %vm570_vm2, %v573_v56, %v576_v54  ;;  %v680_v59 = vsel %vm673_vm3, %v676_v57, %v679_v55 }
 0x146   :  { %v578_v60 = vsel %vm567_vm4, nan, %v577_v58  ;;  %v681_v61 = vsel %vm567_vm4, nan, %v680_v59 }
 0x147   :  { %v688_v62 = vsel %vm687_vm15, %v578_v60, %v681_v61 }
 0x148   :  { %689 = vst [vmem:[#allocation2] sm:$0xff] %v688_v62 }
 0x149   :  { %792 = shalt.err (!%p789_p4)
}
 0x14a   :  { %s793_s20 = scalar_lea.hbm %s887_s3, 128 }
 0x14b   :  { %p794_p5 = scmp.ne.s32.totalorder %s887_s3, %s793_s20  ;;  %p797_p6 = scmp.lt.u32.totalorder %s793_s20, %s887_s3 }
 0x14d   :  { %p799_p7 = pnand %p797_p6, %p794_p5 }
 0x14f   :  { %802 = shalt.err (!%p799_p7)
}
 0x150   :  { %699 = dma.vmem_to_hbm [thread:$0]  %s697_s16, 128, %s887_s3, [#allocation3]  }
 0x151   :  { %803 = dma.done.wait [#allocation3], 128  }
 0x152   :  { %804 = vsyncadd [#allocation3], 4294967168 }
 0x153   :  { %703 = vsyncpa [#allocation3], 1 }

</bundles_post_ra>
